<compile_context>
chip_gen: v7x
topology: tpu7x:2x2x1
jax: 0.10.0
libtpu: 0.0.40
codegen_flags: <defaults>
</compile_context>

<pallas_src>
import functools

import jax
import jax.numpy as jnp
from jax.experimental import pallas as pl
from jax.experimental.pallas import tpu as pltpu

EPS = 1e-5  # A2C_A3C_CONFIG['epsilon']


# --------------------------------------------------------------------------- #
# Kernel (transposed / batch-in-lanes)
# --------------------------------------------------------------------------- #
def _ac_kernel(xt_ref, w0_ref, w1_ref, wac_ref, wh_ref, v_ref, out_ref,
               *, S, H, A, eps):
    """One batch tile of the actor-critic forward, batch on the lane axis.

    xt_ref : (S,  TILE_B)   transposed input states
    w0_ref : (H,  S)        W0^T
    w1_ref : (H,  H)        W1^T
    wac_ref: (2H, H)        [Wa | Wc]^T        (fused actor/critic first layer)
    wh_ref : (OUT, 2H)      block-diag head^T  ([Wmu|Wls]^T on actor rows, Wv^T on critic rows)
    v_ref  : (6H+6H+OUT, 1) packed biases / LayerNorm affines (f32 column vectors)
    out_ref: (OUT, TILE_B)  packed [mu ; log_sigma ; value] (f32), lane-dense
    """
    W2 = 2 * H
    OUT = 2 * A + 1
    cd = w0_ref.dtype  # matmul-input dtype

    # ---- unpack bias / LN-affine column vectors (static, 8-aligned row slices) ----
    off = [0]

    def take(n):
        s = off[0]
        off[0] = s + n
        return v_ref[s:s + n, :]            # (n, 1) f32, lane-broadcasts over batch

    b0, g0, be0 = take(H), take(H), take(H)
    b1, g1, be1 = take(H), take(H), take(H)
    b_ac, g_ac, be_ac = take(W2), take(W2), take(W2)
    b_head = take(OUT)

    inv_h = 1.0 / H

    def stats(y):
        # Fused single-pass LayerNorm stats over the feature (sublane) axis.
        s1 = jnp.sum(y, axis=0, keepdims=True)
        s2 = jnp.sum(y * y, axis=0, keepdims=True)
        m = s1 * inv_h
        var = s2 * inv_h - m * m
        return m, jax.lax.rsqrt(var + eps)

    def ln_tanh(y, g, be):
        m, rstd = stats(y)
        return jnp.tanh((y - m) * rstd * g + be)

    xt = xt_ref[...].astype(cd)                                           # (S, T)

    # shared trunk (Dropout == identity at inference)
    h = jnp.dot(w0_ref[...], xt, preferred_element_type=jnp.float32) + b0
    h = ln_tanh(h, g0, be0)                                               # (H, T)
    h = jnp.dot(w1_ref[...], h.astype(cd), preferred_element_type=jnp.float32) + b1
    h = ln_tanh(h, g1, be1)                                               # (H, T)

    # fused actor/critic first layer: one (2H, H) @ (H, T) matmul; per-half LN
    # stats combined with a sublane-iota select -> single 2H-row norm+tanh pass.
    y = jnp.dot(wac_ref[...], h.astype(cd), preferred_element_type=jnp.float32) + b_ac
    m_a, r_a = stats(y[:H, :])
    m_c, r_c = stats(y[H:, :])
    row = jax.lax.broadcasted_iota(jnp.int32, y.shape, 0)
    in_actor = row < H
    m = jnp.where(in_actor, m_a, m_c)
    rstd = jnp.where(in_actor, r_a, r_c)
    ac = jnp.tanh((y - m) * rstd * g_ac + be_ac)                          # (2H, T)

    # fused heads: block-diagonal (OUT, 2H) @ (2H, T) matmul -> [mu ; ls ; value]
    out = jnp.dot(wh_ref[...], ac.astype(cd), preferred_element_type=jnp.float32) + b_head

    # clamp only the log_sigma rows [A, 2A)
    orow = jax.lax.broadcasted_iota(jnp.int32, out.shape, 0)
    is_ls = jnp.logical_and(orow >= A, orow < 2 * A)
    out_ref[...] = jnp.where(is_ls, jnp.clip(out, -20.0, 2.0), out)


# --------------------------------------------------------------------------- #
# One-time parameter packing (do at load time, NOT per forward call)
# --------------------------------------------------------------------------- #
def pack_params(params, compute_dtype=jnp.float32):
    """22 PyTorch-layout arrays -> 4 transposed weight mats + 1 column-vector slab.

    compute_dtype=bf16 halves weight HBM/VMEM traffic; the bf16 MXU is native on
    v5e/v6e/v7x and LayerNorm/tanh stay f32, so it is safe on all generations.
    """
    (w0, b0, g0, be0, w1, b1, g1, be1, wa, ba, ga, bea,
     wmu, bmu, wls, bls, wc, bc, gc, bec, wv, bv) = params
    S, H = w0.shape
    A = wmu.shape[1]
    W2, OUT = 2 * H, 2 * A + 1

    w0t = jnp.asarray(w0, jnp.float32).T.astype(compute_dtype)            # (H, S)
    w1t = jnp.asarray(w1, jnp.float32).T.astype(compute_dtype)            # (H, H)
    wact = jnp.concatenate([wa, wc], axis=1).T.astype(compute_dtype)      # (2H, H)

    wh = jnp.zeros((OUT, W2), jnp.float32)
    wh = wh.at[:2 * A, :H].set(jnp.concatenate([wmu, wls], axis=1).T)
    wh = wh.at[2 * A:, H:].set(jnp.asarray(wv, jnp.float32).T)
    wht = wh.astype(compute_dtype)                                        # (OUT, 2H)

    def col(v):
        return jnp.asarray(v, jnp.float32).reshape(-1, 1)

    vslab = jnp.concatenate(
        [col(b0), col(g0), col(be0),
         col(b1), col(g1), col(be1),
         col(jnp.concatenate([ba, bc], axis=1)),
         col(jnp.concatenate([ga, gc], axis=1)),
         col(jnp.concatenate([bea, bec], axis=1)),
         col(jnp.concatenate([bmu, bls, bv], axis=1))],
        axis=0)                                                           # (6H+6H+OUT, 1)

    return {"w0t": w0t, "w1t": w1t, "wact": wact, "wht": wht, "vslab": vslab}


# --------------------------------------------------------------------------- #
# Wrapper
# --------------------------------------------------------------------------- #
def _choose_tile_b(B, max_tile_b=1024):
    """Batch (lane) tile.  Single tile for small B; otherwise 128-aligned tiles
    sized for >= 2 grid steps (shards the 'parallel' axis over v7x's two TCs)
    while staying far below v7x's 64 MiB VMEM.  v5e/v6e tolerate larger tiles."""
    if B <= 256:
        return B
    tile = min(max_tile_b, (B + 1) // 2)
    return max(128, (tile // 128) * 128)


def actor_critic_forward(x, packed, *, max_tile_b=1024):
    """Returns (mu, log_sigma, value).  `x` is (B, state_dim) in its stored
    dtype (cast happens in-kernel — no extra wrapper HBM pass over x)."""
    w0t, w1t, wact, wht, vslab = (packed["w0t"], packed["w1t"], packed["wact"],
                                  packed["wht"], packed["vslab"])
    H, S = w0t.shape
    OUT, W2 = wht.shape
    A = (OUT - 1) // 2
    B = x.shape[0]

    # Layout plumbing only: batch goes on the 128-lane axis so x loads and the
    # packed output stores are lane-dense.
    xt = x.T                                                              # (S, B)

    TILE_B = _choose_tile_b(B, max_tile_b)
    grid = (pl.cdiv(B, TILE_B),)

    cost = pl.CostEstimate(
        flops=2 * B * (S * H + H * H + H * W2 + W2 * OUT),
        transcendentals=B * (4 * H + 4),        # tanh rows + 4 rsqrt per sample
        bytes_accessed=x.size * x.dtype.itemsize + B * OUT * 4
        + sum(a.size * a.dtype.itemsize for a in (w0t, w1t, wact, wht, vslab)),
    )

    kernel = functools.partial(_ac_kernel, S=S, H=H, A=A, eps=EPS)

    packed_out = pl.pallas_call(
        kernel,
        out_shape=jax.ShapeDtypeStruct((OUT, B), jnp.float32),
        grid_spec=pltpu.PrefetchScalarGridSpec(
            num_scalar_prefetch=0,
            grid=grid,
            in_specs=[
                pl.BlockSpec((S, TILE_B), lambda i: (0, i)),   # x^T: batch-tiled, lane-dense
                pl.BlockSpec(w0t.shape, lambda i: (0, 0)),     # weights: VMEM-resident
                pl.BlockSpec(w1t.shape, lambda i: (0, 0)),
                pl.BlockSpec(wact.shape, lambda i: (0, 0)),
                pl.BlockSpec(wht.shape, lambda i: (0, 0)),
                pl.BlockSpec(vslab.shape, lambda i: (0, 0)),   # biases / LN affines
            ],
            out_specs=pl.BlockSpec((OUT, TILE_B), lambda i: (0, i)),  # lane-dense store
        ),
        compiler_params=pltpu.CompilerParams(dimension_semantics=("parallel",)),
        cost_estimate=cost,
    )(xt, w0t, w1t, wact, wht, vslab)

    mu = packed_out[:A, :].T
    log_sigma = packed_out[A:2 * A, :].T
    value = packed_out[2 * A:, :].T
    return mu, log_sigma, value


# --------------------------------------------------------------------------- #
# Synthetic params + pure-JAX reference
# --------------------------------------------------------------------------- #
def init_params(key, state_dim, action_dim, hidden_units):
    """Deterministic synthetic parameter init (not a checkpoint load)."""
    h0, h1, h2 = hidden_units

    def linear(key, fan_in, fan_out):
        kw, kb = jax.random.split(key)
        scale = 1.0 / jnp.sqrt(fan_in)
        w = jax.random.uniform(kw, (fan_in, fan_out), jnp.float32, -scale, scale)
        b = jax.random.uniform(kb, (1, fan_out), jnp.float32, -scale, scale)
        return w, b

    def layernorm(dim):
        return jnp.ones((1, dim), jnp.float32), jnp.zeros((1, dim), jnp.float32)

    keys = jax.random.split(key, 7)
    w0, b0 = linear(keys[0], state_dim, h0); g0, be0 = layernorm(h0)
    w1, b1 = linear(keys[1], h0, h1);        g1, be1 = layernorm(h1)
    wa, ba = linear(keys[2], h1, h2);        ga, bea = layernorm(h2)
    wmu, bmu = linear(keys[3], h2, action_dim)
    wls, bls = linear(keys[4], h2, action_dim)
    wc, bc = linear(keys[5], h1, h2);        gc, bec = layernorm(h2)
    wv, bv = linear(keys[6], h2, 1)

    return (w0, b0, g0, be0,
            w1, b1, g1, be1,
            wa, ba, ga, bea,
            wmu, bmu, wls, bls,
            wc, bc, gc, bec,
            wv, bv)


def reference_forward(x, params):
    (w0, b0, g0, be0, w1, b1, g1, be1, wa, ba, ga, bea,
     wmu, bmu, wls, bls, wc, bc, gc, bec, wv, bv) = params

    def block(x, w, b, g, be):
        y = x @ w + b
        m = jnp.mean(y, -1, keepdims=True)
        v = jnp.mean((y - m) ** 2, -1, keepdims=True)
        return jnp.tanh((y - m) / jnp.sqrt(v + EPS) * g + be)

    h = block(block(x, w0, b0, g0, be0), w1, b1, g1, be1)
    a = block(h, wa, ba, ga, bea)
    mu = a @ wmu + bmu
    ls = jnp.clip(a @ wls + bls, -20.0, 2.0)
    c = block(h, wc, bc, gc, bec)
    val = c @ wv + bv
    return mu, ls, val


if __name__ == "__main__":
    B, state_dim, action_dim = 8, 16, 4
    hidden_units = [32, 32, 32]

    key = jax.random.PRNGKey(0)
    kx, kp = jax.random.split(key)
    x = jax.random.normal(kx, (B, state_dim), jnp.float32)
    params = init_params(kp, state_dim, action_dim, hidden_units)

    mu_r, ls_r, val_r = reference_forward(x, params)

    fwd = jax.jit(actor_critic_forward)

    # f32 path (near-exact; correct on v5e / v6e / v7x). Packing is one-time.
    packed_f32 = pack_params(params, jnp.float32)
    mu, log_sigma, value = fwd(x, packed_f32)
    jax.block_until_ready((mu, log_sigma, value))
    assert mu.shape == (B, action_dim)
    assert log_sigma.shape == (B, action_dim)
    assert value.shape == (B, 1)
    assert jnp.allclose(mu, mu_r, atol=2e-5)
    assert jnp.allclose(log_sigma, ls_r, atol=2e-5)
    assert jnp.allclose(value, val_r, atol=2e-5)

    # bf16 matmul-input path (weight HBM/VMEM traffic halved; bf16 MXU is native
    # on all of v5e/v6e/v7x; LayerNorm/tanh stay f32 on the VPU/EUP).
    packed_bf16 = pack_params(params, jnp.bfloat16)
    mu_b, ls_b, val_b = fwd(x, packed_bf16)
    jax.block_until_ready((mu_b, ls_b, val_b))
    assert jnp.allclose(mu_b, mu_r, atol=1e-1)
    assert jnp.allclose(ls_b, ls_r, atol=1e-1)
    assert jnp.allclose(val_b, val_r, atol=1e-1)

    print("KERNEL_OK")
</pallas_src>

<mosaic_0001>
module attributes {stable_mosaic.version = 11 : i64} {
  func.func @_ac_kernel(%arg0: i32, %arg1: memref<16x8xf32, #tpu.memory_space<vmem>>, %arg2: memref<32x16xf32, #tpu.memory_space<vmem>>, %arg3: memref<32x32xf32, #tpu.memory_space<vmem>>, %arg4: memref<64x32xf32, #tpu.memory_space<vmem>>, %arg5: memref<9x64xf32, #tpu.memory_space<vmem>>, %arg6: memref<393x1xf32, #tpu.memory_space<vmem>>, %arg7: memref<9x8xf32, #tpu.memory_space<vmem>>) attributes {dimension_semantics = [#tpu.dimension_semantics<parallel>], iteration_bounds = array<i64: 1>, scalar_prefetch = 0 : i64, scratch_operands = 0 : i64, tpu.core_type = #tpu.core_type<tc>, window_params = [{transform_indices = @transform_0, window_bounds = array<i64: 16, 8>}, {pipeline_mode = #tpu.pipeline_mode<synchronous>, transform_indices = @transform_1, window_bounds = array<i64: 32, 16>}, {pipeline_mode = #tpu.pipeline_mode<synchronous>, transform_indices = @transform_2, window_bounds = array<i64: 32, 32>}, {pipeline_mode = #tpu.pipeline_mode<synchronous>, transform_indices = @transform_3, window_bounds = array<i64: 64, 32>}, {pipeline_mode = #tpu.pipeline_mode<synchronous>, transform_indices = @transform_4, window_bounds = array<i64: 9, 64>}, {pipeline_mode = #tpu.pipeline_mode<synchronous>, transform_indices = @transform_5, window_bounds = array<i64: 393, 1>}, {transform_indices = @transform_6, window_bounds = array<i64: 9, 8>}]} {
    %c0 = arith.constant 0 : index
    %c0_0 = arith.constant 0 : index
    %0 = vector.load %arg6[%c0, %c0_0] : memref<393x1xf32, #tpu.memory_space<vmem>>, vector<32x1xf32>
    %c32 = arith.constant 32 : index
    %c0_1 = arith.constant 0 : index
    %1 = vector.load %arg6[%c32, %c0_1] : memref<393x1xf32, #tpu.memory_space<vmem>>, vector<32x1xf32>
    %c64 = arith.constant 64 : index
    %c0_2 = arith.constant 0 : index
    %2 = vector.load %arg6[%c64, %c0_2] : memref<393x1xf32, #tpu.memory_space<vmem>>, vector<32x1xf32>
    %c96 = arith.constant 96 : index
    %c0_3 = arith.constant 0 : index
    %3 = vector.load %arg6[%c96, %c0_3] : memref<393x1xf32, #tpu.memory_space<vmem>>, vector<32x1xf32>
    %c128 = arith.constant 128 : index
    %c0_4 = arith.constant 0 : index
    %4 = vector.load %arg6[%c128, %c0_4] : memref<393x1xf32, #tpu.memory_space<vmem>>, vector<32x1xf32>
    %c160 = arith.constant 160 : index
    %c0_5 = arith.constant 0 : index
    %5 = vector.load %arg6[%c160, %c0_5] : memref<393x1xf32, #tpu.memory_space<vmem>>, vector<32x1xf32>
    %c192 = arith.constant 192 : index
    %c0_6 = arith.constant 0 : index
    %6 = vector.load %arg6[%c192, %c0_6] : memref<393x1xf32, #tpu.memory_space<vmem>>, vector<64x1xf32>
    %c256 = arith.constant 256 : index
    %c0_7 = arith.constant 0 : index
    %7 = vector.load %arg6[%c256, %c0_7] : memref<393x1xf32, #tpu.memory_space<vmem>>, vector<64x1xf32>
    %c320 = arith.constant 320 : index
    %c0_8 = arith.constant 0 : index
    %8 = vector.load %arg6[%c320, %c0_8] : memref<393x1xf32, #tpu.memory_space<vmem>>, vector<64x1xf32>
    %c384 = arith.constant 384 : index
    %c0_9 = arith.constant 0 : index
    %9 = vector.load %arg6[%c384, %c0_9] : memref<393x1xf32, #tpu.memory_space<vmem>>, vector<9x1xf32>
    %c0_10 = arith.constant 0 : index
    %c0_11 = arith.constant 0 : index
    %10 = vector.load %arg1[%c0_10, %c0_11] : memref<16x8xf32, #tpu.memory_space<vmem>>, vector<16x8xf32>
    %c0_12 = arith.constant 0 : index
    %c0_13 = arith.constant 0 : index
    %11 = vector.load %arg2[%c0_12, %c0_13] : memref<32x16xf32, #tpu.memory_space<vmem>>, vector<32x16xf32>
    %cst = arith.constant dense<0.000000e+00> : vector<32x8xf32>
    %12 = tpu.matmul %11, %10, %cst {dimension_numbers = #tpu.dot_dimension_numbers<[1], [0], [0], [1], [0, 0, 1, 1], [], []>} : vector<32x16xf32>, vector<16x8xf32>, vector<32x8xf32> -> vector<32x8xf32>
    %13 = vector.broadcast %0 : vector<32x1xf32> to vector<32x8xf32>
    %14 = arith.addf %12, %13 : vector<32x8xf32>
    %cst_14 = arith.constant dense<0.000000e+00> : vector<8xf32>
    %15 = vector.multi_reduction <add>, %14, %cst_14 [0] : vector<32x8xf32> to vector<8xf32>
    %16 = vector.shape_cast %15 : vector<8xf32> to vector<1x8xf32>
    %17 = arith.mulf %14, %14 : vector<32x8xf32>
    %cst_15 = arith.constant dense<0.000000e+00> : vector<8xf32>
    %18 = vector.multi_reduction <add>, %17, %cst_15 [0] : vector<32x8xf32> to vector<8xf32>
    %19 = vector.shape_cast %18 : vector<8xf32> to vector<1x8xf32>
    %cst_16 = arith.constant 3.125000e-02 : f32
    %20 = vector.broadcast %cst_16 : f32 to vector<1x8xf32>
    %21 = arith.mulf %16, %20 : vector<1x8xf32>
    %cst_17 = arith.constant 3.125000e-02 : f32
    %22 = vector.broadcast %cst_17 : f32 to vector<1x8xf32>
    %23 = arith.mulf %19, %22 : vector<1x8xf32>
    %24 = arith.mulf %21, %21 : vector<1x8xf32>
    %25 = arith.subf %23, %24 : vector<1x8xf32>
    %cst_18 = arith.constant 9.99999974E-6 : f32
    %26 = vector.broadcast %cst_18 : f32 to vector<1x8xf32>
    %27 = arith.addf %25, %26 : vector<1x8xf32>
    %28 = math.rsqrt %27 : vector<1x8xf32>
    %29 = vector.broadcast %21 : vector<1x8xf32> to vector<32x8xf32>
    %30 = arith.subf %14, %29 : vector<32x8xf32>
    %31 = vector.broadcast %28 : vector<1x8xf32> to vector<32x8xf32>
    %32 = arith.mulf %30, %31 : vector<32x8xf32>
    %33 = vector.broadcast %1 : vector<32x1xf32> to vector<32x8xf32>
    %34 = arith.mulf %32, %33 : vector<32x8xf32>
    %35 = vector.broadcast %2 : vector<32x1xf32> to vector<32x8xf32>
    %36 = arith.addf %34, %35 : vector<32x8xf32>
    %37 = math.tanh %36 : vector<32x8xf32>
    %c0_19 = arith.constant 0 : index
    %c0_20 = arith.constant 0 : index
    %38 = vector.load %arg3[%c0_19, %c0_20] : memref<32x32xf32, #tpu.memory_space<vmem>>, vector<32x32xf32>
    %cst_21 = arith.constant dense<0.000000e+00> : vector<32x8xf32>
    %39 = tpu.matmul %38, %37, %cst_21 {dimension_numbers = #tpu.dot_dimension_numbers<[1], [0], [0], [1], [0, 0, 1, 1], [], []>} : vector<32x32xf32>, vector<32x8xf32>, vector<32x8xf32> -> vector<32x8xf32>
    %40 = vector.broadcast %3 : vector<32x1xf32> to vector<32x8xf32>
    %41 = arith.addf %39, %40 : vector<32x8xf32>
    %cst_22 = arith.constant dense<0.000000e+00> : vector<8xf32>
    %42 = vector.multi_reduction <add>, %41, %cst_22 [0] : vector<32x8xf32> to vector<8xf32>
    %43 = vector.shape_cast %42 : vector<8xf32> to vector<1x8xf32>
    %44 = arith.mulf %41, %41 : vector<32x8xf32>
    %cst_23 = arith.constant dense<0.000000e+00> : vector<8xf32>
    %45 = vector.multi_reduction <add>, %44, %cst_23 [0] : vector<32x8xf32> to vector<8xf32>
    %46 = vector.shape_cast %45 : vector<8xf32> to vector<1x8xf32>
    %cst_24 = arith.constant 3.125000e-02 : f32
    %47 = vector.broadcast %cst_24 : f32 to vector<1x8xf32>
    %48 = arith.mulf %43, %47 : vector<1x8xf32>
    %cst_25 = arith.constant 3.125000e-02 : f32
    %49 = vector.broadcast %cst_25 : f32 to vector<1x8xf32>
    %50 = arith.mulf %46, %49 : vector<1x8xf32>
    %51 = arith.mulf %48, %48 : vector<1x8xf32>
    %52 = arith.subf %50, %51 : vector<1x8xf32>
    %cst_26 = arith.constant 9.99999974E-6 : f32
    %53 = vector.broadcast %cst_26 : f32 to vector<1x8xf32>
    %54 = arith.addf %52, %53 : vector<1x8xf32>
    %55 = math.rsqrt %54 : vector<1x8xf32>
    %56 = vector.broadcast %48 : vector<1x8xf32> to vector<32x8xf32>
    %57 = arith.subf %41, %56 : vector<32x8xf32>
    %58 = vector.broadcast %55 : vector<1x8xf32> to vector<32x8xf32>
    %59 = arith.mulf %57, %58 : vector<32x8xf32>
    %60 = vector.broadcast %4 : vector<32x1xf32> to vector<32x8xf32>
    %61 = arith.mulf %59, %60 : vector<32x8xf32>
    %62 = vector.broadcast %5 : vector<32x1xf32> to vector<32x8xf32>
    %63 = arith.addf %61, %62 : vector<32x8xf32>
    %64 = math.tanh %63 : vector<32x8xf32>
    %c0_27 = arith.constant 0 : index
    %c0_28 = arith.constant 0 : index
    %65 = vector.load %arg4[%c0_27, %c0_28] : memref<64x32xf32, #tpu.memory_space<vmem>>, vector<64x32xf32>
    %cst_29 = arith.constant dense<0.000000e+00> : vector<64x8xf32>
    %66 = tpu.matmul %65, %64, %cst_29 {dimension_numbers = #tpu.dot_dimension_numbers<[1], [0], [0], [1], [0, 0, 1, 1], [], []>} : vector<64x32xf32>, vector<32x8xf32>, vector<64x8xf32> -> vector<64x8xf32>
    %67 = vector.broadcast %6 : vector<64x1xf32> to vector<64x8xf32>
    %68 = arith.addf %66, %67 : vector<64x8xf32>
    %69 = vector.extract_strided_slice %68 {offsets = [0, 0], sizes = [32, 8], strides = [1, 1]} : vector<64x8xf32> to vector<32x8xf32>
    %cst_30 = arith.constant dense<0.000000e+00> : vector<8xf32>
    %70 = vector.multi_reduction <add>, %69, %cst_30 [0] : vector<32x8xf32> to vector<8xf32>
    %71 = vector.shape_cast %70 : vector<8xf32> to vector<1x8xf32>
    %72 = arith.mulf %69, %69 : vector<32x8xf32>
    %cst_31 = arith.constant dense<0.000000e+00> : vector<8xf32>
    %73 = vector.multi_reduction <add>, %72, %cst_31 [0] : vector<32x8xf32> to vector<8xf32>
    %74 = vector.shape_cast %73 : vector<8xf32> to vector<1x8xf32>
    %cst_32 = arith.constant 3.125000e-02 : f32
    %75 = vector.broadcast %cst_32 : f32 to vector<1x8xf32>
    %76 = arith.mulf %71, %75 : vector<1x8xf32>
    %cst_33 = arith.constant 3.125000e-02 : f32
    %77 = vector.broadcast %cst_33 : f32 to vector<1x8xf32>
    %78 = arith.mulf %74, %77 : vector<1x8xf32>
    %79 = arith.mulf %76, %76 : vector<1x8xf32>
    %80 = arith.subf %78, %79 : vector<1x8xf32>
    %cst_34 = arith.constant 9.99999974E-6 : f32
    %81 = vector.broadcast %cst_34 : f32 to vector<1x8xf32>
    %82 = arith.addf %80, %81 : vector<1x8xf32>
    %83 = math.rsqrt %82 : vector<1x8xf32>
    %84 = vector.extract_strided_slice %68 {offsets = [32, 0], sizes = [32, 8], strides = [1, 1]} : vector<64x8xf32> to vector<32x8xf32>
    %cst_35 = arith.constant dense<0.000000e+00> : vector<8xf32>
    %85 = vector.multi_reduction <add>, %84, %cst_35 [0] : vector<32x8xf32> to vector<8xf32>
    %86 = vector.shape_cast %85 : vector<8xf32> to vector<1x8xf32>
    %87 = arith.mulf %84, %84 : vector<32x8xf32>
    %cst_36 = arith.constant dense<0.000000e+00> : vector<8xf32>
    %88 = vector.multi_reduction <add>, %87, %cst_36 [0] : vector<32x8xf32> to vector<8xf32>
    %89 = vector.shape_cast %88 : vector<8xf32> to vector<1x8xf32>
    %cst_37 = arith.constant 3.125000e-02 : f32
    %90 = vector.broadcast %cst_37 : f32 to vector<1x8xf32>
    %91 = arith.mulf %86, %90 : vector<1x8xf32>
    %cst_38 = arith.constant 3.125000e-02 : f32
    %92 = vector.broadcast %cst_38 : f32 to vector<1x8xf32>
    %93 = arith.mulf %89, %92 : vector<1x8xf32>
    %94 = arith.mulf %91, %91 : vector<1x8xf32>
    %95 = arith.subf %93, %94 : vector<1x8xf32>
    %cst_39 = arith.constant 9.99999974E-6 : f32
    %96 = vector.broadcast %cst_39 : f32 to vector<1x8xf32>
    %97 = arith.addf %95, %96 : vector<1x8xf32>
    %98 = math.rsqrt %97 : vector<1x8xf32>
    %99 = tpu.iota {dimensions = array<i32: 0>} : vector<64x8xi32>
    %c32_i32 = arith.constant 32 : i32
    %100 = vector.broadcast %c32_i32 : i32 to vector<64x8xi32>
    %101 = arith.cmpi slt, %99, %100 : vector<64x8xi32>
    %102 = vector.shape_cast %76 : vector<1x8xf32> to vector<1x8xf32>
    %103 = vector.broadcast %102 : vector<1x8xf32> to vector<64x8xf32>
    %104 = vector.shape_cast %91 : vector<1x8xf32> to vector<1x8xf32>
    %105 = vector.broadcast %104 : vector<1x8xf32> to vector<64x8xf32>
    %106 = arith.select %101, %103, %105 : vector<64x8xi1>, vector<64x8xf32>
    %107 = vector.shape_cast %83 : vector<1x8xf32> to vector<1x8xf32>
    %108 = vector.broadcast %107 : vector<1x8xf32> to vector<64x8xf32>
    %109 = vector.shape_cast %98 : vector<1x8xf32> to vector<1x8xf32>
    %110 = vector.broadcast %109 : vector<1x8xf32> to vector<64x8xf32>
    %111 = arith.select %101, %108, %110 : vector<64x8xi1>, vector<64x8xf32>
    %112 = arith.subf %68, %106 : vector<64x8xf32>
    %113 = arith.mulf %112, %111 : vector<64x8xf32>
    %114 = vector.broadcast %7 : vector<64x1xf32> to vector<64x8xf32>
    %115 = arith.mulf %113, %114 : vector<64x8xf32>
    %116 = vector.broadcast %8 : vector<64x1xf32> to vector<64x8xf32>
    %117 = arith.addf %115, %116 : vector<64x8xf32>
    %118 = math.tanh %117 : vector<64x8xf32>
    %c0_40 = arith.constant 0 : index
    %c0_41 = arith.constant 0 : index
    %119 = vector.load %arg5[%c0_40, %c0_41] : memref<9x64xf32, #tpu.memory_space<vmem>>, vector<9x64xf32>
    %cst_42 = arith.constant dense<0.000000e+00> : vector<9x8xf32>
    %120 = tpu.matmul %119, %118, %cst_42 {dimension_numbers = #tpu.dot_dimension_numbers<[1], [0], [0], [1], [0, 0, 1, 1], [], []>} : vector<9x64xf32>, vector<64x8xf32>, vector<9x8xf32> -> vector<9x8xf32>
    %121 = vector.broadcast %9 : vector<9x1xf32> to vector<9x8xf32>
    %122 = arith.addf %120, %121 : vector<9x8xf32>
    %123 = tpu.iota {dimensions = array<i32: 0>} : vector<9x8xi32>
    %c4_i32 = arith.constant 4 : i32
    %124 = vector.broadcast %c4_i32 : i32 to vector<9x8xi32>
    %125 = arith.cmpi sge, %123, %124 : vector<9x8xi32>
    %c8_i32 = arith.constant 8 : i32
    %126 = vector.broadcast %c8_i32 : i32 to vector<9x8xi32>
    %127 = arith.cmpi slt, %123, %126 : vector<9x8xi32>
    %128 = arith.andi %125, %127 : vector<9x8xi1>
    %cst_43 = arith.constant -2.000000e+01 : f32
    %cst_44 = arith.constant 2.000000e+00 : f32
    %129 = vector.broadcast %cst_43 : f32 to vector<9x8xf32>
    %130 = arith.maximumf %129, %122 : vector<9x8xf32>
    %131 = vector.broadcast %cst_44 : f32 to vector<9x8xf32>
    %132 = arith.minimumf %131, %130 : vector<9x8xf32>
    %133 = arith.select %128, %132, %122 : vector<9x8xi1>, vector<9x8xf32>
    %c0_45 = arith.constant 0 : index
    %c0_46 = arith.constant 0 : index
    %134 = vector.load %arg7[%c0_45, %c0_46] : memref<9x8xf32, #tpu.memory_space<vmem>>, vector<9x8xf32>
    tpu.vector_store %arg7[%c0_45, %c0_46], %133 {strides = array<i32>} : memref<9x8xf32, #tpu.memory_space<vmem>>, vector<9x8xf32>,
    return
  }
  func.func @transform_0(%arg0: i32) -> (i32, i32) {
    %c0_i32 = arith.constant 0 : i32
    %c0_i32_0 = arith.constant 0 : i32
    return %c0_i32, %arg0 : i32, i32
  }
  func.func @transform_1(%arg0: i32) -> (i32, i32) {
    %c0_i32 = arith.constant 0 : i32
    %c0_i32_0 = arith.constant 0 : i32
    %c0_i32_1 = arith.constant 0 : i32
    return %c0_i32, %c0_i32_0 : i32, i32
  }
  func.func @transform_2(%arg0: i32) -> (i32, i32) {
    %c0_i32 = arith.constant 0 : i32
    %c0_i32_0 = arith.constant 0 : i32
    %c0_i32_1 = arith.constant 0 : i32
    return %c0_i32, %c0_i32_0 : i32, i32
  }
  func.func @transform_3(%arg0: i32) -> (i32, i32) {
    %c0_i32 = arith.constant 0 : i32
    %c0_i32_0 = arith.constant 0 : i32
    %c0_i32_1 = arith.constant 0 : i32
    return %c0_i32, %c0_i32_0 : i32, i32
  }
  func.func @transform_4(%arg0: i32) -> (i32, i32) {
    %c0_i32 = arith.constant 0 : i32
    %c0_i32_0 = arith.constant 0 : i32
    %c0_i32_1 = arith.constant 0 : i32
    return %c0_i32, %c0_i32_0 : i32, i32
  }
  func.func @transform_5(%arg0: i32) -> (i32, i32) {
    %c0_i32 = arith.constant 0 : i32
    %c0_i32_0 = arith.constant 0 : i32
    %c0_i32_1 = arith.constant 0 : i32
    return %c0_i32, %c0_i32_0 : i32, i32
  }
  func.func @transform_6(%arg0: i32) -> (i32, i32) {
    %c0_i32 = arith.constant 0 : i32
    %c0_i32_0 = arith.constant 0 : i32
    return %c0_i32, %arg0 : i32, i32
  }
}

</mosaic_0001>

<bundles_post_ra>
// kernel: actor_critic_forward.1
= control target key start
LH: loop header
LB: loop body
LE: loop exit
PB: predicated region body
PF: predicated region fallthrough
CT: control target
= control target key end

     0   :  { %v1223_v0 = vmov 0   ;;  %vm99_vm0 = vcmask 130048   ;;  %vm318_vm1 = vcmask 261120   ;;  %vm197_vm2 = vcmask 64512   ;;  %s1580_s5 = inlined_call_operand.vmem [shape: f32[393,1], index: 5, kind: input, shape index: {}]   ;;  %s1581_s0 = inlined_call_operand.vmem [shape: f32[16,8], index: 0, kind: input, shape index: {}]   ;;  %s1582_s1 = inlined_call_operand.vmem [shape: f32[32,16], index: 1, kind: input, shape index: {}]   ;;  %s1583_s2 = inlined_call_operand.vmem [shape: f32[32,32], index: 2, kind: input, shape index: {}]   ;;  %s1584_s3 = inlined_call_operand.vmem [shape: f32[64,32], index: 3, kind: input, shape index: {}]   ;;  %s1585_s4 = inlined_call_operand.vmem [shape: f32[9,64], index: 4, kind: input, shape index: {}]   ;;  %s1586_s6 = inlined_call_operand.vmem [shape: f32[9,8], index: 6, kind: output, shape index: {}]  }
   0x1   :  { %1182 = vset.pattern.permute.xlu1 %v1223_v0  ;;  %1181 = vset.pattern.permute.xlu0 %v1223_v0  ;;  %v25_v1 = vld [vmem:[%s1580_s5 + $0x10] sm:$0xff]  ;;  %v23_v2 = vld [vmem:[%s1580_s5] sm:$0xff]  ;;  %v74_v4 = vld [vmem:[%s1581_s0 + $0x8] sm:$0xff]  ;;  %vm926_vm3 = vcmask 523264   ;;  %vm1021_vm4 = vcmask 57344  }
   0x2   :  { %v73_v3 = vld [vmem:[%s1581_s0] sm:$0xff]  ;;  %91 = vperm.xlu1 %1182, %v25_v1   ;;  %81 = vperm.xlu0 %1181, %v23_v2   ;;  %v26_v6 = vld [vmem:[%s1580_s5 + $0x18] sm:$0xff]  ;;  %v24_v8 = vld [vmem:[%s1580_s5 + $0x8] sm:$0xff] }
   0x3   :  { %v1144_v5 = vpack.c.bf16 %v74_v4, %v73_v3  ;;  %v75_v7 = vld [vmem:[%s1582_s1] sm:$0xff]  ;;  %v76_v9 = vld [vmem:[%s1582_s1 + $0x8] sm:$0xff]  ;;  %v77_v11 = vld [vmem:[%s1582_s1 + $0x10] sm:$0xff] }
   0x4   :  { %1085 = vmatprep.mubr.msk.f32.mxu0 %vm99_vm0, %v75_v7  ;;  %v28_v10 = vld [vmem:[%s1580_s5 + $0x28] sm:$0xff]  ;;  %v27_v12 = vld [vmem:[%s1580_s5 + $0x20] sm:$0xff]  ;;  %v78_v13 = vld [vmem:[%s1582_s1 + $0x18] sm:$0xff] }
   0x5   :  { %1145 = vmatprep.subr.bf16.mxu0 %v1144_v5  ;;  %v32_v14 = vld [vmem:[%s1580_s5 + $0x48] sm:$0xff]  ;;  %v31_v15 = vld [vmem:[%s1580_s5 + $0x40] sm:$0xff]  ;;  %v30_v16 = vld [vmem:[%s1580_s5 + $0x38] sm:$0xff] }
   0x6   :  { %1147 = vmatpush3.bf16.msra.mxu0 %v1144_v5  ;;  %96 = vperm.xlu1 %1182, %v26_v6   ;;  %v29_v17 = vld [vmem:[%s1580_s5 + $0x30] sm:$0xff]  ;;  %v34_v18 = vld [vmem:[%s1580_s5 + $0x58] sm:$0xff]  ;;  %v36_v20 = vld [vmem:[%s1580_s5 + $0x68] sm:$0xff] }
   0x7   :  { %86 = vperm.xlu0 %1181, %v24_v8   ;;  %v33_v19 = vld [vmem:[%s1580_s5 + $0x50] sm:$0xff]  ;;  %v35_v21 = vld [vmem:[%s1580_s5 + $0x60] sm:$0xff]  ;;  %v38_v22 = vld [vmem:[%s1580_s5 + $0x78] sm:$0xff] }
   0x8   :  { %v37_v23 = vld [vmem:[%s1580_s5 + $0x70] sm:$0xff]  ;;  %v40_v24 = vld [vmem:[%s1580_s5 + $0x88] sm:$0xff]  ;;  %v39_v25 = vld [vmem:[%s1580_s5 + $0x80] sm:$0xff] }
   0x9   :  { %1086 = vmatmul.mubr.msk.f32.vlgmr.msra.gmra.mrb[0].mxu0 %vm99_vm0, %v76_v9  ;;  %v44_v26 = vld [vmem:[%s1580_s5 + $0xa8] sm:$0xff]  ;;  %v43_v27 = vld [vmem:[%s1580_s5 + $0xa0] sm:$0xff]  ;;  %v42_v28 = vld [vmem:[%s1580_s5 + $0x98] sm:$0xff] }
   0xa   :  { %249 = vperm.xlu1 %1182, %v28_v10   ;;  %1088 = vmatprep.mubr.msk.f32.mxu0 %vm99_vm0, %v77_v11  ;;  %v41_v29 = vld [vmem:[%s1580_s5 + $0x90] sm:$0xff]  ;;  %v46_v30 = vld [vmem:[%s1580_s5 + $0xb8] sm:$0xff]  ;;  %v48_v32 = vld [vmem:[%s1580_s5 + $0xc8] sm:$0xff] }
   0xb   :  { %244 = vperm.xlu0 %1181, %v27_v12   ;;  %v45_v31 = vld [vmem:[%s1580_s5 + $0xb0] sm:$0xff]  ;;  %v47_v33 = vld [vmem:[%s1580_s5 + $0xc0] sm:$0xff]  ;;  %v50_v34 = vld [vmem:[%s1580_s5 + $0xd8] sm:$0xff] }
   0xc   :  { %v49_v35 = vld [vmem:[%s1580_s5 + $0xd0] sm:$0xff]  ;;  %v52_v36 = vld [vmem:[%s1580_s5 + $0xe8] sm:$0xff]  ;;  %v51_v37 = vld [vmem:[%s1580_s5 + $0xe0] sm:$0xff] }
   0xd   :  { %1089 = vmatmul.mubr.msk.f32.gmra.mrb[2].mxu0 %vm99_vm0, %v78_v13  ;;  %v54_v38 = vld [vmem:[%s1580_s5 + $0xf8] sm:$0xff]  ;;  %v53_v39 = vld [vmem:[%s1580_s5 + $0xf0] sm:$0xff]  ;;  %v56_v40 = vld [vmem:[%s1580_s5 + $0x108] sm:$0xff] }
   0xe   :  { %273 = vperm.xlu1 %1182, %v32_v14   ;;  %v55_v41 = vld [vmem:[%s1580_s5 + $0x100] sm:$0xff]  ;;  %v64_v42 = vld [vmem:[%s1580_s5 + $0x148] sm:$0xff]  ;;  %v58_v44 = vld [vmem:[%s1580_s5 + $0x118] sm:$0xff] }
   0xf   :  { %268 = vperm.xlu0 %1181, %v31_v15   ;;  %v63_v43 = vld [vmem:[%s1580_s5 + $0x140] sm:$0xff]  ;;  %v57_v45 = vld [vmem:[%s1580_s5 + $0x110] sm:$0xff]  ;;  %v66_v46 = vld [vmem:[%s1580_s5 + $0x158] sm:$0xff] }
  0x10   :  { %v65_v47 = vld [vmem:[%s1580_s5 + $0x150] sm:$0xff]  ;;  %v60_v48 = vld [vmem:[%s1580_s5 + $0x128] sm:$0xff]  ;;  %v59_v49 = vld [vmem:[%s1580_s5 + $0x120] sm:$0xff] }
  0x11   :  { %v68_v50 = vld [vmem:[%s1580_s5 + $0x168] sm:$0xff]  ;;  %v67_v51 = vld [vmem:[%s1580_s5 + $0x160] sm:$0xff]  ;;  %v62_v52 = vld [vmem:[%s1580_s5 + $0x138] sm:$0xff] }
  0x12   :  { %259 = vperm.xlu1 %1182, %v30_v16   ;;  %v61_v53 = vld [vmem:[%s1580_s5 + $0x130] sm:$0xff]  ;;  %v70_v54 = vld [vmem:[%s1580_s5 + $0x178] sm:$0xff]  ;;  %v72_v56 = vld [vmem:[%s1580_s5 + $0x188] sm:$0x1] }
  0x13   :  { %254 = vperm.xlu0 %1181, %v29_v17   ;;  %v69_v55 = vld [vmem:[%s1580_s5 + $0x170] sm:$0xff]  ;;  %v71_v57 = vld [vmem:[%s1580_s5 + $0x180] sm:$0xff] }
  0x14   :  { %v294_v58 = vld [vmem:[%s1583_s2] sm:$0xff] }
  0x15   :  { %1099 = vmatprep.mubr.msk.f32.mxu1 %vm318_vm1, %v294_v58 }
  0x16   :  { %283 = vperm.xlu1 %1182, %v34_v18  }
  0x17   :  { %278 = vperm.xlu0 %1181, %v33_v19  }
  0x1a   :  { %305 = vperm.xlu1 %1182, %v36_v20  }
  0x1b   :  { %300 = vperm.xlu0 %1181, %v35_v21  }
  0x1e   :  { %315 = vperm.xlu1 %1182, %v38_v22  }
  0x1f   :  { %310 = vperm.xlu0 %1181, %v37_v23  }
  0x22   :  { %467 = vperm.xlu1 %1182, %v40_v24  }
  0x23   :  { %462 = vperm.xlu0 %1181, %v39_v25  }
  0x26   :  { %491 = vperm.xlu1 %1182, %v44_v26  }
  0x27   :  { %486 = vperm.xlu0 %1181, %v43_v27  }
  0x2a   :  { %477 = vperm.xlu1 %1182, %v42_v28  }
  0x2b   :  { %472 = vperm.xlu0 %1181, %v41_v29  }
  0x2e   :  { %501 = vperm.xlu1 %1182, %v46_v30  }
  0x2f   :  { %496 = vperm.xlu0 %1181, %v45_v31  }
  0x32   :  { %527 = vperm.xlu1 %1182, %v48_v32  }
  0x33   :  { %522 = vperm.xlu0 %1181, %v47_v33  }
  0x36   :  { %537 = vperm.xlu1 %1182, %v50_v34  }
  0x37   :  { %532 = vperm.xlu0 %1181, %v49_v35  }
  0x3a   :  { %547 = vperm.xlu1 %1182, %v52_v36  }
  0x3b   :  { %542 = vperm.xlu0 %1181, %v51_v37  }
  0x3e   :  { %557 = vperm.xlu1 %1182, %v54_v38  }
  0x3f   :  { %552 = vperm.xlu0 %1181, %v53_v39  }
  0x42   :  { %817 = vperm.xlu1 %1182, %v56_v40  }
  0x43   :  { %812 = vperm.xlu0 %1181, %v55_v41  }
  0x46   :  { %865 = vperm.xlu1 %1182, %v64_v42  }
  0x47   :  { %860 = vperm.xlu0 %1181, %v63_v43  }
  0x4a   :  { %827 = vperm.xlu1 %1182, %v58_v44  }
  0x4b   :  { %822 = vperm.xlu0 %1181, %v57_v45  }
  0x4e   :  { %875 = vperm.xlu1 %1182, %v66_v46  }
  0x4f   :  { %870 = vperm.xlu0 %1181, %v65_v47  }
  0x52   :  { %837 = vperm.xlu1 %1182, %v60_v48  }
  0x53   :  { %832 = vperm.xlu0 %1181, %v59_v49  }
  0x56   :  { %885 = vperm.xlu1 %1182, %v68_v50  }
  0x57   :  { %880 = vperm.xlu0 %1181, %v67_v51  }
  0x5a   :  { %847 = vperm.xlu1 %1182, %v62_v52  }
  0x5b   :  { %842 = vperm.xlu0 %1181, %v61_v53  }
  0x5e   :  { %895 = vperm.xlu1 %1182, %v70_v54  }
  0x5f   :  { %890 = vperm.xlu0 %1181, %v69_v55  }
  0x62   :  { %923 = vperm.xlu1 %1182, %v72_v56  }
  0x63   :  { %918 = vperm.xlu0 %1181, %v71_v57  }
  0x81   :  { %v82_v59 = vpop.permute.xlu0 %81  ;;  %v92_v60 = vpop.permute.xlu1 %91 }
  0x85   :  { %v97_v4 = vpop.permute.xlu1 %96 }
  0x86   :  { %v87_v61 = vpop.permute.xlu0 %86 }
  0x89   :  { %v250_v46 = vpop.permute.xlu1 %249 }
  0x8a   :  { %v245_v44 = vpop.permute.xlu0 %244 }
  0x8d   :  { %v274_v49 = vpop.permute.xlu1 %273 }
  0x8e   :  { %v269_v48 = vpop.permute.xlu0 %268 }
  0x91   :  { %v260_v51 = vpop.permute.xlu1 %259 }
  0x92   :  { %v255_v50 = vpop.permute.xlu0 %254 }
  0xdc   :  { %v1087_v62 = vpop.f32.mrb[0].mxu0 }
  0xdd   :  { %v184_v63 = vadd.f32 %v1087_v62, %v87_v61  ;;  %v178_v0 = vpop.f32.mrb[1].mxu0  ;;  %v279_v61 = vpop.permute.xlu0 %278 }
  0xde   :  { %v179_v1 = vadd.f32 %v178_v0, %v82_v59  ;;  %v284_v62 = vpop.permute.xlu1 %283 }
  0xdf   :  { %v199_v2 = vsel %vm197_vm2, %v184_v63, 0.0  ;;  %v212_v3 = vmul.f32 %v184_v63, %v184_v63 }
  0xe0   :  { %v198_v5 = vsel %vm197_vm2, %v179_v1, 0.0  ;;  %v211_v6 = vmul.f32 %v179_v1, %v179_v1  ;;  %v1090_v7 = vpop.f32.mrb[2].mxu0 }
  0xe1   :  { %v216_v8 = vsel %vm197_vm2, %v212_v3, 0.0  ;;  %v200_v9 = vadd.f32 %v199_v2, %v198_v5  ;;  %v194_v10 = vadd.f32 %v1090_v7, %v97_v4  ;;  %v188_v11 = vpop.f32.mrb[3].mxu0 }
  0xe2   :  { %v215_v12 = vsel %vm197_vm2, %v211_v6, 0.0  ;;  %v189_v13 = vadd.f32 %v188_v11, %v92_v60  ;;  %v297_v11 = vld [vmem:[%s1583_s2 + $0x18] sm:$0xff] }
  0xe3   :  { %v217_v14 = vadd.f32 %v216_v8, %v215_v12  ;;  %v214_v15 = vmul.f32 %v194_v10, %v194_v10  ;;  %v203_v19 = vsel %vm197_vm2, %v194_v10, 0.0  ;;  %v512_v12 = vld [vmem:[%s1584_s3] sm:$0xff] }
  0xe4   :  { %v201_v16 = vsel %vm197_vm2, %v189_v13, 0.0  ;;  %v213_v17 = vmul.f32 %v189_v13, %v189_v13  ;;  %1113 = vmatprep.mubr.msk.f32.mxu0 %vm318_vm1, %v512_v12 }
  0xe5   :  { %v202_v18 = vadd.f32 %v201_v16, %v200_v9  ;;  %v220_v23 = vsel %vm197_vm2, %v214_v15, 0.0  ;;  %v295_v9 = vld [vmem:[%s1583_s2 + $0x8] sm:$0xff] }
  0xe6   :  { %v218_v20 = vsel %vm197_vm2, %v213_v17, 0.0 }
  0xe7   :  { %v204_v21 = vadd.f32 %v203_v19, %v202_v18  ;;  %v219_v22 = vadd.f32 %v218_v20, %v217_v14  ;;  %v301_v14 = vpop.permute.xlu0 %300 }
  0xe9   :  { %v205_v24 = vrot.slane %v204_v21, 4  ;;  %v221_v25 = vadd.f32 %v220_v23, %v219_v22 }
  0xeb   :  { %v206_v26 = vadd.f32 %v205_v24, %v204_v21  ;;  %v222_v27 = vrot.slane %v221_v25, 4 }
  0xed   :  { %v207_v28 = vrot.slane %v206_v26, 2  ;;  %v223_v29 = vadd.f32 %v222_v27, %v221_v25  ;;  %v311_v25 = vpop.permute.xlu0 %310 }
  0xef   :  { %v208_v30 = vadd.f32 %v207_v28, %v206_v26  ;;  %v224_v31 = vrot.slane %v223_v29, 2 }
  0xf1   :  { %v209_v32 = vrot.slane %v208_v30, 1  ;;  %v225_v33 = vadd.f32 %v224_v31, %v223_v29 }
  0xf3   :  { %v210_v34 = vadd.f32 %v209_v32, %v208_v30  ;;  %v226_v35 = vrot.slane %v225_v33, 1 }
  0xf5   :  { %v227_v36 = vadd.f32 %v226_v35, %v225_v33  ;;  %v228_v37 = vmul.f32 0.03125, %v210_v34 }
  0xf7   :  { %v229_v38 = vmul.f32 0.03125, %v227_v36  ;;  %v230_v39 = vmul.f32 %v228_v37, %v228_v37  ;;  %v236_v40 = vsub.f32 %v189_v13, %v228_v37  ;;  %v234_v41 = vsub.f32 %v179_v1, %v228_v37  ;;  %v306_v13 = vpop.permute.xlu1 %305 }
  0xf8   :  { %v235_v42 = vsub.f32 %v184_v63, %v228_v37  ;;  %v237_v43 = vsub.f32 %v194_v10, %v228_v37  ;;  %v296_v10 = vld [vmem:[%s1583_s2 + $0x10] sm:$0xff] }
  0xf9   :  { %v231_v45 = vsub.f32 %v229_v38, %v230_v39 }
  0xfb   :  { %v232_v47 = vadd.f32 1e-05, %v231_v45  ;;  %v316_v21 = vpop.permute.xlu1 %315 }
  0xfd   :  { %1183 = vrsqrt.f32 %v232_v47 }
 0x107   :  { %v1184_v52 = vpop.eup %1183 }
 0x108   :  { %v240_v53 = vmul.f32 %v1184_v52, %v236_v40  ;;  %v238_v54 = vmul.f32 %v1184_v52, %v234_v41  ;;  %v239_v55 = vmul.f32 %v1184_v52, %v235_v42  ;;  %v241_v56 = vmul.f32 %v1184_v52, %v237_v43 }
 0x10a   :  { %v264_v57 = vmul.f32 %v255_v50, %v240_v53  ;;  %v262_v58 = vmul.f32 %v245_v44, %v238_v54  ;;  %v263_v59 = vmul.f32 %v250_v46, %v239_v55  ;;  %v265_v60 = vmul.f32 %v260_v51, %v241_v56 }
 0x10c   :  { %v288_v63 = vadd.f32 %v279_v61, %v264_v57  ;;  %v286_v0 = vadd.f32 %v269_v48, %v262_v58  ;;  %v287_v1 = vadd.f32 %v274_v49, %v263_v59  ;;  %v289_v2 = vadd.f32 %v284_v62, %v265_v60  ;;  %v463_v62 = vpop.permute.xlu0 %462 }
 0x10e   :  { %1185 = vtanh.f32 %v288_v63 }
 0x10f   :  { %1187 = vtanh.f32 %v286_v0  ;;  %v468_v0 = vpop.permute.xlu1 %467 }
 0x110   :  { %1189 = vtanh.f32 %v287_v1 }
 0x111   :  { %1191 = vtanh.f32 %v289_v2  ;;  %v487_v2 = vpop.permute.xlu0 %486 }
 0x118   :  { %v1186_v3 = vpop.eup %1185 }
 0x119   :  { %v1188_v4 = vpop.eup %1187 }
 0x11a   :  { %v1190_v5 = vpop.eup %1189 }
 0x11b   :  { %v1192_v6 = vpop.eup %1191  ;;  %v1148_v7 = vpack.c.bf16 %v1190_v5, %v1188_v4  ;;  %v473_v4 = vpop.permute.xlu0 %472 }
 0x11c   :  { %v1152_v8 = vpack.c.bf16 %v1192_v6, %v1186_v3  ;;  %v492_v3 = vpop.permute.xlu1 %491 }
 0x11d   :  { %1149 = vmatprep.subr.bf16.mxu1 %v1148_v7 }
 0x11e   :  { %1151 = vmatpush3.bf16.msra.mxu1 %v1148_v7 }
 0x11f   :  { %1153 = vmatprep.subr.bf16.mxu1 %v1152_v8 }
 0x120   :  { %v478_v5 = vpop.permute.xlu1 %477 }
 0x122   :  { %1155 = vmatpush3.bf16.msra.mxu1 %v1152_v8 }
 0x125   :  { %1100 = vmatmul.mubr.msk.f32.vlgmr.msra.gmra.mrb[0].mxu1 %vm318_vm1, %v295_v9 }
 0x126   :  { %1102 = vmatprep.mubr.msk.f32.mxu1 %vm318_vm1, %v296_v10 }
 0x129   :  { %1103 = vmatmul.mubr.msk.f32.gmra.mrb[2].mxu1 %vm318_vm1, %v297_v11 }
 0x1f8   :  { %v1101_v15 = vpop.f32.mrb[0].mxu1 }
 0x1f9   :  { %v403_v16 = vadd.f32 %v1101_v15, %v306_v13  ;;  %v397_v17 = vpop.f32.mrb[1].mxu1  ;;  %v497_v15 = vpop.permute.xlu0 %496 }
 0x1fa   :  { %v398_v18 = vadd.f32 %v397_v17, %v301_v14 }
 0x1fb   :  { %v417_v19 = vsel %vm197_vm2, %v403_v16, 0.0  ;;  %v430_v20 = vmul.f32 %v403_v16, %v403_v16 }
 0x1fc   :  { %v416_v22 = vsel %vm197_vm2, %v398_v18, 0.0  ;;  %v429_v23 = vmul.f32 %v398_v18, %v398_v18  ;;  %v1104_v24 = vpop.f32.mrb[2].mxu1 }
 0x1fd   :  { %v434_v26 = vsel %vm197_vm2, %v430_v20, 0.0  ;;  %v418_v27 = vadd.f32 %v417_v19, %v416_v22  ;;  %v413_v28 = vadd.f32 %v1104_v24, %v316_v21  ;;  %v407_v29 = vpop.f32.mrb[3].mxu1 }
 0x1fe   :  { %v433_v30 = vsel %vm197_vm2, %v429_v23, 0.0  ;;  %v408_v31 = vadd.f32 %v407_v29, %v311_v25  ;;  %v515_v29 = vld [vmem:[%s1584_s3 + $0x18] sm:$0xff] }
 0x1ff   :  { %v435_v32 = vadd.f32 %v434_v26, %v433_v30  ;;  %v432_v33 = vmul.f32 %v413_v28, %v413_v28  ;;  %v421_v37 = vsel %vm197_vm2, %v413_v28, 0.0  ;;  %v516_v30 = vld [vmem:[%s1584_s3 + $0x20] sm:$0xff] }
 0x200   :  { %v419_v34 = vsel %vm197_vm2, %v408_v31, 0.0  ;;  %v431_v35 = vmul.f32 %v408_v31, %v408_v31 }
 0x201   :  { %v420_v36 = vadd.f32 %v419_v34, %v418_v27  ;;  %v438_v41 = vsel %vm197_vm2, %v432_v33, 0.0  ;;  %v513_v27 = vld [vmem:[%s1584_s3 + $0x8] sm:$0xff]  ;;  %v519_v33 = vld [vmem:[%s1584_s3 + $0x38] sm:$0xff]  ;;  %v914_v34 = vld [vmem:[%s1585_s4] sm:$0xff] }
 0x202   :  { %v436_v38 = vsel %vm197_vm2, %v431_v35, 0.0  ;;  %1141 = vmatprep.mubr.msk.f32.mxu1 %vm926_vm3, %v914_v34  ;;  %v523_v35 = vpop.permute.xlu0 %522 }
 0x203   :  { %v422_v39 = vadd.f32 %v421_v37, %v420_v36  ;;  %v437_v40 = vadd.f32 %v436_v38, %v435_v32  ;;  %v518_v32 = vld [vmem:[%s1584_s3 + $0x30] sm:$0xff] }
 0x205   :  { %v423_v42 = vrot.slane %v422_v39, 4  ;;  %v439_v43 = vadd.f32 %v438_v41, %v437_v40 }
 0x206   :  { %v533_v37 = vpop.permute.xlu0 %532 }
 0x207   :  { %v424_v44 = vadd.f32 %v423_v42, %v422_v39  ;;  %v440_v45 = vrot.slane %v439_v43, 4 }
 0x209   :  { %v425_v46 = vrot.slane %v424_v44, 2  ;;  %v441_v47 = vadd.f32 %v440_v45, %v439_v43 }
 0x20a   :  { %v543_v42 = vpop.permute.xlu0 %542 }
 0x20b   :  { %v426_v48 = vadd.f32 %v425_v46, %v424_v44  ;;  %v442_v49 = vrot.slane %v441_v47, 2 }
 0x20d   :  { %v427_v50 = vrot.slane %v426_v48, 1  ;;  %v443_v51 = vadd.f32 %v442_v49, %v441_v47 }
 0x20f   :  { %v428_v52 = vadd.f32 %v427_v50, %v426_v48  ;;  %v444_v53 = vrot.slane %v443_v51, 1 }
 0x211   :  { %v445_v54 = vadd.f32 %v444_v53, %v443_v51  ;;  %v446_v55 = vmul.f32 0.03125, %v428_v52 }
 0x213   :  { %v447_v56 = vmul.f32 0.03125, %v445_v54  ;;  %v448_v57 = vmul.f32 %v446_v55, %v446_v55  ;;  %v454_v58 = vsub.f32 %v408_v31, %v446_v55  ;;  %v452_v59 = vsub.f32 %v398_v18, %v446_v55  ;;  %v517_v31 = vld [vmem:[%s1584_s3 + $0x28] sm:$0xff] }
 0x214   :  { %v453_v60 = vsub.f32 %v403_v16, %v446_v55  ;;  %v455_v61 = vsub.f32 %v413_v28, %v446_v55  ;;  %v502_v16 = vpop.permute.xlu1 %501  ;;  %v514_v28 = vld [vmem:[%s1584_s3 + $0x10] sm:$0xff] }
 0x215   :  { %v449_v63 = vsub.f32 %v447_v56, %v448_v57  ;;  %v553_v57 = vpop.permute.xlu0 %552 }
 0x217   :  { %v450_v1 = vadd.f32 1e-05, %v449_v63 }
 0x218   :  { %v528_v36 = vpop.permute.xlu1 %527 }
 0x219   :  { %1193 = vrsqrt.f32 %v450_v1 }
 0x21c   :  { %v538_v38 = vpop.permute.xlu1 %537 }
 0x220   :  { %v548_v44 = vpop.permute.xlu1 %547 }
 0x223   :  { %v1194_v6 = vpop.eup %1193 }
 0x224   :  { %v458_v7 = vmul.f32 %v1194_v6, %v454_v58  ;;  %v456_v8 = vmul.f32 %v1194_v6, %v452_v59  ;;  %v457_v9 = vmul.f32 %v1194_v6, %v453_v60  ;;  %v459_v10 = vmul.f32 %v1194_v6, %v455_v61 }
 0x226   :  { %v482_v11 = vmul.f32 %v473_v4, %v458_v7  ;;  %v480_v12 = vmul.f32 %v463_v62, %v456_v8  ;;  %v481_v13 = vmul.f32 %v468_v0, %v457_v9  ;;  %v483_v14 = vmul.f32 %v478_v5, %v459_v10  ;;  %v558_v62 = vpop.permute.xlu1 %557 }
 0x228   :  { %v506_v17 = vadd.f32 %v497_v15, %v482_v11  ;;  %v504_v18 = vadd.f32 %v487_v2, %v480_v12  ;;  %v505_v19 = vadd.f32 %v492_v3, %v481_v13  ;;  %v507_v20 = vadd.f32 %v502_v16, %v483_v14 }
 0x22a   :  { %1195 = vtanh.f32 %v506_v17 }
 0x22b   :  { %1197 = vtanh.f32 %v504_v18  ;;  %v1540_v18 = vpop.permute.xlu0 %812 }
 0x22c   :  { %1199 = vtanh.f32 %v505_v19 }
 0x22d   :  { %1201 = vtanh.f32 %v507_v20 }
 0x234   :  { %v1196_v21 = vpop.eup %1195 }
 0x235   :  { %v1198_v22 = vpop.eup %1197 }
 0x236   :  { %v1200_v23 = vpop.eup %1199 }
 0x237   :  { %v1202_v24 = vpop.eup %1201  ;;  %v1156_v25 = vpack.c.bf16 %v1200_v23, %v1198_v22  ;;  %v1547_v22 = vpop.permute.xlu1 %817 }
 0x238   :  { %v1160_v26 = vpack.c.bf16 %v1202_v24, %v1196_v21 }
 0x239   :  { %1157 = vmatprep.subr.bf16.mxu0 %v1156_v25 }
 0x23a   :  { %1159 = vmatpush3.bf16.msra.mxu0 %v1156_v25 }
 0x23b   :  { %1161 = vmatprep.subr.bf16.mxu0 %v1160_v26 }
 0x23e   :  { %1163 = vmatpush3.bf16.msra.mxu0 %v1160_v26 }
 0x241   :  { %1114 = vmatmul.mubr.msk.f32.vlgmr.msra.gmra.mrb[4].mxu0 %vm318_vm1, %v513_v27 }
 0x242   :  { %1116 = vmatprep.mubr.msk.f32.mxu0 %vm318_vm1, %v514_v28 }
 0x245   :  { %1117 = vmatmul.mubr.msk.f32.gmra.mrb[6].mxu0 %vm318_vm1, %v515_v29 }
 0x246   :  { %1119 = vmatprep.mubr.msk.f32.mxu0 %vm318_vm1, %v516_v30 }
 0x249   :  { %1120 = vmatmul.mubr.msk.f32.gmra.mrb[8].mxu0 %vm318_vm1, %v517_v31 }
 0x24a   :  { %1122 = vmatprep.mubr.msk.f32.mxu0 %vm318_vm1, %v518_v32 }
 0x24d   :  { %1123 = vmatmul.mubr.msk.f32.gmra.mrb[10].mxu0 %vm318_vm1, %v519_v33 }
 0x314   :  { %v1115_v39 = vpop.f32.mrb[4].mxu0 }
 0x315   :  { %v1499_v40 = vadd.f32 %v1115_v39, %v528_v36  ;;  %v650_v41 = vpop.f32.mrb[5].mxu0 }
 0x316   :  { %v1501_v43 = vadd.f32 %v650_v41, %v523_v35  ;;  %v866_v41 = vpop.permute.xlu1 %865 }
 0x317   :  { %v690_v45 = vsel %vm197_vm2, %v1499_v40, 0.0  ;;  %v703_v46 = vmul.f32 %v1499_v40, %v1499_v40 }
 0x318   :  { %v689_v47 = vsel %vm197_vm2, %v1501_v43, 0.0  ;;  %v702_v48 = vmul.f32 %v1501_v43, %v1501_v43  ;;  %v1118_v49 = vpop.f32.mrb[6].mxu0 }
 0x319   :  { %v707_v50 = vsel %vm197_vm2, %v703_v46, 0.0  ;;  %v691_v51 = vadd.f32 %v690_v45, %v689_v47  ;;  %v1512_v52 = vadd.f32 %v1118_v49, %v538_v38  ;;  %v660_v53 = vpop.f32.mrb[7].mxu0  ;;  %v861_v38 = vpop.permute.xlu0 %860 }
 0x31a   :  { %v706_v54 = vsel %vm197_vm2, %v702_v48, 0.0  ;;  %v1515_v55 = vadd.f32 %v660_v53, %v533_v37 }
 0x31b   :  { %v708_v56 = vadd.f32 %v707_v50, %v706_v54  ;;  %v705_v58 = vmul.f32 %v1512_v52, %v1512_v52  ;;  %v694_v2 = vsel %vm197_vm2, %v1512_v52, 0.0 }
 0x31c   :  { %v692_v59 = vsel %vm197_vm2, %v1515_v55, 0.0  ;;  %v704_v60 = vmul.f32 %v1515_v55, %v1515_v55  ;;  %v1121_v61 = vpop.f32.mrb[8].mxu0 }
 0x31d   :  { %v693_v63 = vadd.f32 %v692_v59, %v691_v51  ;;  %v1523_v0 = vadd.f32 %v1121_v61, %v548_v44  ;;  %v670_v1 = vpop.f32.mrb[9].mxu0  ;;  %v711_v9 = vsel %vm197_vm2, %v705_v58, 0.0  ;;  %v828_v58 = vpop.permute.xlu1 %827 }
 0x31e   :  { %v709_v3 = vsel %vm197_vm2, %v704_v60, 0.0  ;;  %v1528_v4 = vadd.f32 %v670_v1, %v543_v42 }
 0x31f   :  { %v695_v5 = vadd.f32 %v694_v2, %v693_v63  ;;  %v710_v6 = vadd.f32 %v709_v3, %v708_v56  ;;  %v726_v7 = vsel %vm197_vm2, %v1523_v0, 0.0  ;;  %v739_v8 = vmul.f32 %v1523_v0, %v1523_v0 }
 0x320   :  { %v725_v10 = vsel %vm197_vm2, %v1528_v4, 0.0  ;;  %v738_v11 = vmul.f32 %v1528_v4, %v1528_v4  ;;  %v1124_v12 = vpop.f32.mrb[10].mxu0 }
 0x321   :  { %v696_v13 = vrot.slane %v695_v5, 4  ;;  %v712_v14 = vadd.f32 %v711_v9, %v710_v6  ;;  %v743_v15 = vsel %vm197_vm2, %v739_v8, 0.0  ;;  %v727_v16 = vadd.f32 %v726_v7, %v725_v10  ;;  %v680_v17 = vpop.f32.mrb[11].mxu0 }
 0x322   :  { %v742_v19 = vsel %vm197_vm2, %v738_v11, 0.0  ;;  %v1543_v20 = vadd.f32 %v1124_v12, %v558_v62  ;;  %v1545_v21 = vadd.f32 %v680_v17, %v553_v57  ;;  %v823_v57 = vpop.permute.xlu0 %822  ;;  %v876_v12 = vpop.permute.xlu1 %875 }
 0x323   :  { %v697_v23 = vadd.f32 %v696_v13, %v695_v5  ;;  %v713_v24 = vrot.slane %v712_v14, 4  ;;  %v744_v25 = vadd.f32 %v743_v15, %v742_v19 }
 0x324   :  { %v741_v26 = vmul.f32 %v1543_v20, %v1543_v20  ;;  %v728_v27 = vsel %vm197_vm2, %v1545_v21, 0.0  ;;  %v740_v28 = vmul.f32 %v1545_v21, %v1545_v21  ;;  %v730_v32 = vsel %vm197_vm2, %v1543_v20, 0.0 }
 0x325   :  { %v698_v29 = vrot.slane %v697_v23, 2  ;;  %v714_v30 = vadd.f32 %v713_v24, %v712_v14  ;;  %v729_v31 = vadd.f32 %v728_v27, %v727_v16 }
 0x326   :  { %v745_v33 = vsel %vm197_vm2, %v740_v28, 0.0  ;;  %v747_v39 = vsel %vm197_vm2, %v741_v26, 0.0  ;;  %v871_v10 = vpop.permute.xlu0 %870 }
 0x327   :  { %v699_v34 = vadd.f32 %v698_v29, %v697_v23  ;;  %v715_v35 = vrot.slane %v714_v30, 2  ;;  %v731_v36 = vadd.f32 %v730_v32, %v729_v31  ;;  %v746_v37 = vadd.f32 %v745_v33, %v744_v25  ;;  %v838_v23 = vpop.permute.xlu1 %837 }
 0x329   :  { %v700_v42 = vrot.slane %v699_v34, 1  ;;  %v716_v44 = vadd.f32 %v715_v35, %v714_v30  ;;  %v732_v45 = vrot.slane %v731_v36, 4  ;;  %v748_v46 = vadd.f32 %v747_v39, %v746_v37 }
 0x32a   :  { %v833_v17 = vpop.permute.xlu0 %832 }
 0x32b   :  { %v701_v47 = vadd.f32 %v700_v42, %v699_v34  ;;  %v717_v48 = vrot.slane %v716_v44, 1  ;;  %v733_v49 = vadd.f32 %v732_v45, %v731_v36  ;;  %v749_v50 = vrot.slane %v748_v46, 4  ;;  %v886_v31 = vpop.permute.xlu1 %885 }
 0x32d   :  { %v718_v51 = vadd.f32 %v717_v48, %v716_v44  ;;  %v719_v53 = vmul.f32 0.03125, %v701_v47  ;;  %v734_v54 = vrot.slane %v733_v49, 2  ;;  %v750_v56 = vadd.f32 %v749_v50, %v748_v46 }
 0x32e   :  { %v881_v26 = vpop.permute.xlu0 %880 }
 0x32f   :  { %v720_v59 = vmul.f32 0.03125, %v718_v51  ;;  %v721_v60 = vmul.f32 %v719_v53, %v719_v53  ;;  %v796_v61 = vsub.f32 %v1515_v55, %v719_v53  ;;  %v735_v62 = vadd.f32 %v734_v54, %v733_v49  ;;  %v848_v37 = vpop.permute.xlu1 %847 }
 0x330   :  { %v751_v63 = vrot.slane %v750_v56, 2  ;;  %v794_v1 = vsub.f32 %v1501_v43, %v719_v53  ;;  %v795_v2 = vsub.f32 %v1499_v40, %v719_v53  ;;  %v797_v3 = vsub.f32 %v1512_v52, %v719_v53 }
 0x331   :  { %v722_v5 = vsub.f32 %v720_v59, %v721_v60  ;;  %v736_v6 = vrot.slane %v735_v62, 1 }
 0x332   :  { %v752_v7 = vadd.f32 %v751_v63, %v750_v56  ;;  %v843_v36 = vpop.permute.xlu0 %842 }
 0x333   :  { %v723_v8 = vadd.f32 1e-05, %v722_v5  ;;  %v737_v9 = vadd.f32 %v736_v6, %v735_v62  ;;  %v896_v50 = vpop.permute.xlu1 %895  ;;  %v915_v5 = vld [vmem:[%s1585_s4 + $0x8] sm:$0x1]  ;;  %v761_v6 = vlaneseq }
 0x334   :  { %v753_v11 = vrot.slane %v752_v7, 1 }
 0x335   :  { %1203 = vrsqrt.f32 %v723_v8  ;;  %v755_v13 = vmul.f32 0.03125, %v737_v9 }
 0x336   :  { %v754_v14 = vadd.f32 %v753_v11, %v752_v7  ;;  %v762_v11 = vshrl.u32 %v761_v6, 7 }
 0x337   :  { %v757_v55 = vmul.f32 %v755_v13, %v755_v13  ;;  %v800_v15 = vsub.f32 %v1545_v21, %v755_v13  ;;  %v798_v43 = vsub.f32 %v1528_v4, %v755_v13  ;;  %v799_v40 = vsub.f32 %v1523_v0, %v755_v13  ;;  %v924_v7 = vpop.permute.xlu1 %923 }
 0x338   :  { %v756_v16 = vmul.f32 0.03125, %v754_v14  ;;  %v801_v52 = vsub.f32 %v1543_v20, %v755_v13  ;;  %vm1008_vm5 = vcmp.ge.s32.totalorder %v762_v11, 4 }
 0x33a   :  { %v758_v19 = vsub.f32 %v756_v16, %v757_v55 }
 0x33c   :  { %v759_v24 = vadd.f32 1e-05, %v758_v19 }
 0x33e   :  { %1205 = vrsqrt.f32 %v759_v24 }
 0x33f   :  { %v1204_v25 = vpop.eup %1203 }
 0x340   :  { %v804_v27 = vmul.f32 %v1204_v25, %v796_v61  ;;  %v802_v28 = vmul.f32 %v1204_v25, %v794_v1  ;;  %v803_v29 = vmul.f32 %v1204_v25, %v795_v2  ;;  %v805_v30 = vmul.f32 %v1204_v25, %v797_v3 }
 0x342   :  { %v852_v21 = vmul.f32 %v823_v57, %v804_v27  ;;  %v850_v4 = vmul.f32 %v1540_v18, %v802_v28  ;;  %v851_v0 = vmul.f32 %v1547_v22, %v803_v29  ;;  %v853_v32 = vmul.f32 %v828_v58, %v805_v30  ;;  %v891_v22 = vpop.permute.xlu0 %890 }
 0x344   :  { %v900_v33 = vadd.f32 %v871_v10, %v852_v21  ;;  %v898_v20 = vadd.f32 %v861_v38, %v850_v4  ;;  %v899_v34 = vadd.f32 %v866_v41, %v851_v0  ;;  %v901_v35 = vadd.f32 %v876_v12, %v853_v32 }
 0x346   :  { %1207 = vtanh.f32 %v900_v33  ;;  %v919_v9 = vpop.permute.xlu0 %918 }
 0x347   :  { %1209 = vtanh.f32 %v898_v20 }
 0x348   :  { %v1206_v39 = vpop.eup %1205  ;;  %1211 = vtanh.f32 %v899_v34 }
 0x349   :  { %v808_v42 = vmul.f32 %v1206_v39, %v800_v15  ;;  %1213 = vtanh.f32 %v901_v35  ;;  %v806_v44 = vmul.f32 %v1206_v39, %v798_v43  ;;  %v807_v45 = vmul.f32 %v1206_v39, %v799_v40 }
 0x34a   :  { %v809_v46 = vmul.f32 %v1206_v39, %v801_v52 }
 0x34b   :  { %v856_v47 = vmul.f32 %v843_v36, %v808_v42  ;;  %v854_v18 = vmul.f32 %v833_v17, %v806_v44  ;;  %v855_v48 = vmul.f32 %v838_v23, %v807_v45 }
 0x34c   :  { %v857_v49 = vmul.f32 %v848_v37, %v809_v46 }
 0x34d   :  { %v904_v38 = vadd.f32 %v891_v22, %v856_v47  ;;  %v902_v41 = vadd.f32 %v881_v26, %v854_v18  ;;  %v903_v51 = vadd.f32 %v886_v31, %v855_v48 }
 0x34e   :  { %v905_v53 = vadd.f32 %v896_v50, %v857_v49 }
 0x34f   :  { %1215 = vtanh.f32 %v904_v38 }
 0x350   :  { %v1208_v54 = vpop.eup %1207  ;;  %1217 = vtanh.f32 %v902_v41 }
 0x351   :  { %v1210_v56 = vpop.eup %1209  ;;  %1219 = vtanh.f32 %v903_v51 }
 0x352   :  { %v1212_v57 = vpop.eup %1211  ;;  %1221 = vtanh.f32 %v905_v53 }
 0x353   :  { %v1214_v58 = vpop.eup %1213  ;;  %v1164_v59 = vpack.c.bf16 %v1212_v57, %v1210_v56 }
 0x354   :  { %v1168_v60 = vpack.c.bf16 %v1214_v58, %v1208_v54 }
 0x355   :  { %1165 = vmatprep.subr.bf16.mxu1 %v1164_v59 }
 0x356   :  { %1167 = vmatpush3.bf16.msra.mxu1 %v1164_v59 }
 0x357   :  { %1169 = vmatprep.subr.bf16.mxu1 %v1168_v60 }
 0x359   :  { %v1216_v61 = vpop.eup %1215 }
 0x35a   :  { %v1218_v62 = vpop.eup %1217  ;;  %1171 = vmatpush3.bf16.msra.mxu1 %v1168_v60 }
 0x35b   :  { %v1220_v63 = vpop.eup %1219 }
 0x35c   :  { %v1222_v1 = vpop.eup %1221  ;;  %v1172_v2 = vpack.c.bf16 %v1220_v63, %v1218_v62 }
 0x35d   :  { %v1176_v3 = vpack.c.bf16 %v1222_v1, %v1216_v61 }
 0x35e   :  { %1173 = vmatprep.subr.bf16.mxu1 %v1172_v2 }
 0x35f   :  { %1175 = vmatpush3.bf16.msra.mxu1 %v1172_v2 }
 0x360   :  { %1177 = vmatprep.subr.bf16.mxu1 %v1176_v3 }
 0x363   :  { %1179 = vmatpush3.bf16.msra.mxu1 %v1176_v3 }
 0x366   :  { %1142 = vmatmul.mubr.msk.f32.vlgmr.msra.gmra.mrb[4].mxu1 %vm926_vm3, %v915_v5 }
 0x439   :  { %v1143_v8 = vpop.f32.mrb[4].mxu1 }
 0x43a   :  { %v1005_v10 = vadd.f32 %v1143_v8, %v924_v7  ;;  %v999_v12 = vpop.f32.mrb[5].mxu1 }
 0x43b   :  { %v1000_v13 = vadd.f32 %v999_v12, %v919_v9 }
 0x43c   :  { %1022 = vst.msk [vmem:[%s1586_s6 + $0x8] sm:$0x1] %vm1021_vm4, %v1005_v10 }
 0x43d   :  { %v1014_v14 = vmax.f32 %v1000_v13, -20.0 }
 0x43f   :  { %v1016_v55 = vmin.f32 %v1014_v14, 2.0 }
 0x441   :  { %v1018_v15 = vsel %vm1008_vm5, %v1016_v55, %v1000_v13 }
 0x442   :  { %1020 = vst.msk [vmem:[%s1586_s6] sm:$0xff] %vm197_vm2, %v1018_v15 }

</bundles_post_ra>
